<compile_context>
chip_gen: v5e
topology: v5e:2x2
jax: 0.10.0
libtpu: 0.0.40
codegen_flags: <defaults>
</compile_context>

<pallas_src>
import functools

import jax
import jax.numpy as jnp
from jax.experimental import pallas as pl
from jax.experimental.pallas import tpu as pltpu


ALPHA = 0.25
GAMMA = 2.0
WEIGHTS = (1.0, 1.0)

_LANES = 128
_FRAME_BUF_CAP_BYTES = 16 * 1024 * 1024      # per streamed frame buffer (x2 buffered)


# --------------------------------------------------------------------------- #
# helpers
# --------------------------------------------------------------------------- #
def _round_up(x, m):
    return (x + m - 1) // m * m


def _block_bytes(shape, itemsize):
    """VMEM footprint of a block: last two dims padded to (8, 128)."""
    lead = 1
    for d in shape[:-2]:
        lead *= int(d)
    return lead * _round_up(int(shape[-2]), 8) * _round_up(int(shape[-1]), _LANES) * itemsize


def _vmem_capacity_bytes():
    try:
        cap = int(pltpu.get_tpu_info().vmem_capacity_bytes)
        if cap > 0:
            return cap
    except Exception:
        pass
    return 64 * 1024 * 1024                   # conservative fallback (v7x per-core VMEM)


def _pow_gamma(x):
    # gamma is a Python constant; special-case 2.0 to avoid generic pow lowering.
    if GAMMA == 2.0:
        return x * x
    return x ** GAMMA


def _focal_sum(x, t):
    """Sum (not mean) of BCEFocalLoss terms over an f32 (Bt, C) tile.

    Shares one exp(-|x|) between the stable BCE-with-logits and sigmoid.
    """
    e = jnp.exp(-jnp.abs(x))                               # single EUP exp
    bce = jnp.maximum(x, 0.0) - x * t + jnp.log1p(e)       # BCEWithLogits (stable)
    inv = 1.0 / (1.0 + e)
    p = jnp.where(x >= 0.0, inv, e * inv)                  # == sigmoid(x)
    loss = bce * (t * ALPHA * _pow_gamma(1.0 - p) + (1.0 - t) * _pow_gamma(p))
    return jnp.sum(loss)


def _choose_fold(T, C):
    """Fold factor f: the frame tensor is viewed as (B, T/f, f*C) for lane density."""
    if C >= _LANES:
        return 1
    f0 = -(-_LANES // C)                      # smallest fold reaching >=128 lanes
    hi = min(T, 8 * f0)
    # prefer a fold that divides T (free reshape, no pad pass) and is lane-aligned
    for f in range(f0, hi + 1):
        if T % f == 0 and (f * C) % _LANES == 0:
            return f
    for f in range(f0, hi + 1):
        if T % f == 0:
            return f
    # fall back: pad T with -inf (one extra pass; still beats C*itemsize-byte DMA runs)
    return _LANES // C if _LANES % C == 0 else f0


def _choose_b_tile(B):
    # Prefer the smallest sublane-aligned b_tile that still gives >= 2 parallel
    # B tiles (longer contiguous T runs per DMA, smaller resident logit/target/
    # scratch, both v7x TensorCores busy). Fall back to a single full-B tile.
    for cand in (8, 16, 32, 64, 128):
        if B % cand == 0 and B // cand >= 2:
            return cand
    # TODO(synk): for small B (< 16) only one parallel B tile exists; a 2-way T
    # split (per-half max outputs + wrapper-side combine) would engage v7x's
    # second TensorCore but is not implemented here.
    return B


def _plan_tiles(B, T_f, C, c_fold, frame_isz, logit_isz, target_isz,
                b_tile=None, t_tile=None):
    """Pick tiles from a VMEM budget that includes (8,128) padding, both
    double-buffered (b_tile, C) input blocks, the output block and the f32
    scratch accumulator; return (b_tile, t_tile, vmem_limit_bytes)."""
    if b_tile is None:
        b_tile = _choose_b_tile(B)
    assert B % b_tile == 0, "b_tile must divide B"

    cap = _vmem_capacity_bytes()
    vmem_target = min(cap * 5 // 8, 72 * 1024 * 1024)

    fixed = (2 * _block_bytes((b_tile, C), logit_isz)      # logit (double buffered)
             + 2 * _block_bytes((b_tile, C), target_isz)   # target (double buffered)
             + 2 * _block_bytes((8, _LANES), 4)            # output block
             + _block_bytes((b_tile, c_fold), 4))          # f32 max accumulator
    row8 = _block_bytes((b_tile, 8, c_fold), frame_isz)    # 8 streamed (folded) frames
    per_buf = min(_FRAME_BUF_CAP_BYTES, max(row8, (vmem_target - fixed) // 2))

    if t_tile is None:
        t_fit = max(8, (per_buf // row8) * 8)
        t_tile = T_f if T_f <= t_fit else int(t_fit)
    assert t_tile == T_f or t_tile % 8 == 0, \
        "t_tile must be a multiple of 8 or the full (folded) T extent"

    total = fixed + 2 * _block_bytes((b_tile, t_tile, c_fold), frame_isz)
    vmem_limit = max(32 * 1024 * 1024, total + 8 * 1024 * 1024)
    vmem_limit = min(vmem_limit, max(cap - 4 * 1024 * 1024, 32 * 1024 * 1024))
    return b_tile, t_tile, int(vmem_limit)


# --------------------------------------------------------------------------- #
# kernel
# --------------------------------------------------------------------------- #
def _bce_focal_2way_kernel(logit_ref, frame_ref, target_ref, out_ref, max_acc_ref,
                           *, t_total, t_tile, num_t_tiles, fold, n_classes, weights):
    t = pl.program_id(1)

    @pl.when(t == 0)
    def _init():
        max_acc_ref[...] = jnp.full(max_acc_ref.shape, -jnp.inf,
                                    dtype=max_acc_ref.dtype)

    def _accumulate(mask_tail):
        # Streamed T-chunk max in the input dtype (exact for bf16/f32); only the
        # (b_tile, C') result is upcast to f32.
        frame = frame_ref[...]                              # (Bt, Tt, C')
        if mask_tail:
            t_ids = t * t_tile + jax.lax.broadcasted_iota(jnp.int32, frame.shape, 1)
            frame = jnp.where(t_ids < t_total, frame,
                              jnp.asarray(-jnp.inf, dtype=frame.dtype))
        chunk_max = jnp.max(frame, axis=1)                  # (Bt, C')
        max_acc_ref[...] = jnp.maximum(max_acc_ref[...], chunk_max.astype(jnp.float32))

    has_tail = num_t_tiles * t_tile != t_total
    if has_tail:
        # Hot loop stays pure vld+vmax; the iota/compare/select mask only runs
        # on the final T block (required for correctness: edge-block garbage).
        @pl.when(t < num_t_tiles - 1)
        def _hot():
            _accumulate(False)

        @pl.when(t == num_t_tiles - 1)
        def _tail():
            _accumulate(True)
    else:
        _accumulate(False)

    # Finalize once per B tile: undo the lane fold, then focal math on the
    # clipwise logits and the framewise max.
    @pl.when(t == num_t_tiles - 1)
    def _finalize():
        acc = max_acc_ref[...]                              # (Bt, fold * C)
        if fold > 1:
            folded = acc[:, 0:n_classes]
            for k in range(1, fold):
                folded = jnp.maximum(folded, acc[:, k * n_classes:(k + 1) * n_classes])
            acc = folded                                    # (Bt, C)
        tgt = target_ref[...].astype(jnp.float32)
        clip_sum = _focal_sum(logit_ref[...].astype(jnp.float32), tgt)
        aux_sum = _focal_sum(acc, tgt)
        partial = weights[0] * clip_sum + weights[1] * aux_sum
        # Dense (8, 128) store (no masked vst); wrapper sums everything.
        out_ref[...] = jnp.full(out_ref.shape, partial, dtype=jnp.float32)


# --------------------------------------------------------------------------- #
# wrapper
# --------------------------------------------------------------------------- #
def bce_focal_2way_loss(logit, framewise_logit, target, *,
                        weights=WEIGHTS, b_tile=None, t_tile=None):
    """weights[0] * focal(logit, target) + weights[1] * focal(max_T(framewise), target).

    Pass bf16 `framewise_logit` only if the producer already emits bf16 (the
    streamed max is exact in bf16 and halves HBM traffic); do not cast here.
    """
    B, C = logit.shape
    Bf, T, Cf = framewise_logit.shape
    assert (Bf, Cf) == (B, C) and target.shape == (B, C), "shape mismatch"

    if not jnp.issubdtype(target.dtype, jnp.floating):
        target = target.astype(jnp.float32)                 # target.float()

    # Lane-density fold: view (B, T, C) as (B, T/f, f*C) when C < 128.
    # (C >= 128 but not a multiple of 128 is left unpadded: block last dim = full C.)
    fold = _choose_fold(T, C)
    if fold > 1:
        frames = framewise_logit
        T_pad = _round_up(T, fold)
        if T_pad != T:
            frames = jnp.pad(frames, ((0, 0), (0, T_pad - T), (0, 0)),
                             constant_values=-jnp.inf)
        frames = frames.reshape(B, T_pad // fold, fold * C)
    else:
        frames = framewise_logit
    T_f, c_fold = frames.shape[1], frames.shape[2]

    frame_isz = jnp.dtype(frames.dtype).itemsize
    b_tile, t_tile, vmem_limit = _plan_tiles(
        B, T_f, C, c_fold, frame_isz,
        jnp.dtype(logit.dtype).itemsize, jnp.dtype(target.dtype).itemsize,
        b_tile=b_tile, t_tile=t_tile)
    num_b = B // b_tile
    num_t = pl.cdiv(T_f, t_tile)

    kernel = functools.partial(
        _bce_focal_2way_kernel,
        t_total=T_f, t_tile=t_tile, num_t_tiles=num_t,
        fold=fold, n_classes=C,
        weights=tuple(float(w) for w in weights))

    cost = pl.CostEstimate(
        flops=int(frames.size + 40 * 2 * B * C),
        transcendentals=int(2 * B * C),
        bytes_accessed=int(frames.size * frame_isz
                           + logit.size * jnp.dtype(logit.dtype).itemsize
                           + target.size * jnp.dtype(target.dtype).itemsize
                           + num_b * 8 * _LANES * 4),
    )

    partials = pl.pallas_call(
        kernel,
        out_shape=jax.ShapeDtypeStruct((num_b * 8, _LANES), jnp.float32),
        grid_spec=pltpu.PrefetchScalarGridSpec(
            num_scalar_prefetch=0,
            grid=(num_b, num_t),                            # reduction axis last
            in_specs=[
                pl.BlockSpec((b_tile, C), lambda b, t: (b, 0)),
                pl.BlockSpec((b_tile, t_tile, c_fold), lambda b, t: (b, t, 0)),
                pl.BlockSpec((b_tile, C), lambda b, t: (b, 0)),
            ],
            out_specs=pl.BlockSpec((8, _LANES), lambda b, t: (b, 0)),
            scratch_shapes=[pltpu.VMEM((b_tile, c_fold), jnp.float32)],
        ),
        compiler_params=pltpu.CompilerParams(
            dimension_semantics=("parallel", "arbitrary"),
            vmem_limit_bytes=vmem_limit),
        cost_estimate=cost,
    )(logit, frames, target)

    # Every element of each (8,128) block holds that tile's partial sum:
    # sum everything (no strided gather) and fold the 8*128 factor into the mean.
    return jnp.sum(partials) / (8.0 * _LANES) / (B * C)


# --------------------------------------------------------------------------- #
# pure-JAX reference (mirrors the PyTorch module)
# --------------------------------------------------------------------------- #
def _reference(logit, framewise_logit, target):
    def focal(x, t):
        bce = jnp.maximum(x, 0.0) - x * t + jnp.log1p(jnp.exp(-jnp.abs(x)))
        p = jax.nn.sigmoid(x)
        l = t * ALPHA * (1.0 - p) ** GAMMA * bce + (1.0 - t) * p ** GAMMA * bce
        return jnp.mean(l)

    clip_max = jnp.max(framewise_logit.astype(jnp.float32), axis=1)
    tgt = target.astype(jnp.float32)
    return (WEIGHTS[0] * focal(logit.astype(jnp.float32), tgt)
            + WEIGHTS[1] * focal(clip_max, tgt))


if __name__ == "__main__":
    key = jax.random.PRNGKey(0)
    k1, k2, k3, k4, k5, k6 = jax.random.split(key, 6)

    # 1) primary small config (B=2, T=8, C=4): folded lane-dense path (C << 128)
    B, T, C = 2, 8, 4
    logit = jax.random.normal(k1, (B, C), dtype=jnp.float32)
    frames = jax.random.normal(k2, (B, T, C), dtype=jnp.float32)
    target = (jax.random.uniform(k3, (B, C)) > 0.5).astype(jnp.float32)

    loss = jax.block_until_ready(bce_focal_2way_loss(logit, frames, target))
    ref = _reference(logit, frames, target)
    assert jnp.allclose(loss, ref, atol=1e-5, rtol=1e-5), (loss, ref)

    # 2) bf16 framewise input (exact max in bf16; halves streamed HBM traffic)
    frames_bf16 = frames.astype(jnp.bfloat16)
    loss_bf = jax.block_until_ready(bce_focal_2way_loss(logit, frames_bf16, target))
    ref_bf = _reference(logit, frames_bf16, target)
    assert jnp.allclose(loss_bf, ref_bf, atol=1e-5, rtol=1e-5), (loss_bf, ref_bf)

    # 3) uneven streamed T with C >= 128 (no fold): exercises the pl.when-gated tail mask
    C2, T2 = 256, 20
    logit2 = jax.random.normal(k4, (B, C2), dtype=jnp.float32)
    frames2 = jax.random.normal(k5, (B, T2, C2), dtype=jnp.float32)
    target2 = (jax.random.uniform(k3, (B, C2)) > 0.5).astype(jnp.float32)
    loss2 = jax.block_until_ready(
        bce_focal_2way_loss(logit2, frames2, target2, t_tile=8))
    ref2 = _reference(logit2, frames2, target2)
    assert jnp.allclose(loss2, ref2, atol=1e-5, rtol=1e-5), (loss2, ref2)

    # 4) folded path with multiple parallel B tiles and multiple streamed T blocks
    B3, T3, C3 = 16, 512, 4
    logit3 = jax.random.normal(k6, (B3, C3), dtype=jnp.float32)
    frames3 = jax.random.normal(k2, (B3, T3, C3), dtype=jnp.float32)
    target3 = (jax.random.uniform(k4, (B3, C3)) > 0.5).astype(jnp.float32)
    loss3 = jax.block_until_ready(
        bce_focal_2way_loss(logit3, frames3, target3, t_tile=8))
    ref3 = _reference(logit3, frames3, target3)
    assert jnp.allclose(loss3, ref3, atol=1e-5, rtol=1e-5), (loss3, ref3)

    print("KERNEL_OK")
</pallas_src>

<mosaic_0001>
module attributes {stable_mosaic.version = 11 : i64} {
  func.func @_bce_focal_2way_kernel(%arg0: i32, %arg1: i32, %arg2: memref<2x4xf32, #tpu.memory_space<vmem>>, %arg3: memref<2x1x128xf32, #tpu.memory_space<vmem>>, %arg4: memref<2x4xf32, #tpu.memory_space<vmem>>, %arg5: memref<8x128xf32, #tpu.memory_space<vmem>>, %arg6: memref<2x128xf32, #tpu.memory_space<vmem>>) attributes {dimension_semantics = [#tpu.dimension_semantics<parallel>, #tpu.dimension_semantics<arbitrary>], iteration_bounds = array<i64: 1, 1>, scalar_prefetch = 0 : i64, scratch_operands = 1 : i64, tpu.core_type = #tpu.core_type<tc>, window_params = [{transform_indices = @transform_0, window_bounds = array<i64: 2, 4>}, {transform_indices = @transform_1, window_bounds = array<i64: 2, 1, 128>}, {transform_indices = @transform_2, window_bounds = array<i64: 2, 4>}, {transform_indices = @transform_3, window_bounds = array<i64: 8, 128>}]} {
    %c0_i32 = arith.constant 0 : i32
    %0 = arith.cmpi eq, %arg1, %c0_i32 : i32
    %1 = arith.extui %0 : i1 to i32
    %c0_i32_0 = arith.constant 0 : i32
    %2 = arith.cmpi ne, %1, %c0_i32_0 : i32
    scf.if %2 {
      %cst_9 = arith.constant 0xFF800000 : f32
      %11 = vector.broadcast %cst_9 : f32 to vector<2x128xf32>
      %c0_10 = arith.constant 0 : index
      %c0_11 = arith.constant 0 : index
      %12 = vector.load %arg6[%c0_10, %c0_11] : memref<2x128xf32, #tpu.memory_space<vmem>>, vector<2x128xf32>
      tpu.vector_store %arg6[%c0_10, %c0_11], %11 {strides = array<i32>} : memref<2x128xf32, #tpu.memory_space<vmem>>, vector<2x128xf32>,
    } else {
    }
    %c0 = arith.constant 0 : index
    %c0_1 = arith.constant 0 : index
    %c0_2 = arith.constant 0 : index
    %3 = vector.load %arg3[%c0, %c0_1, %c0_2] : memref<2x1x128xf32, #tpu.memory_space<vmem>>, vector<2x1x128xf32>
    %cst = arith.constant dense<0xFF800000> : vector<2x128xf32>
    %4 = vector.multi_reduction <maximumf>, %3, %cst [1] : vector<2x1x128xf32> to vector<2x128xf32>
    %c0_3 = arith.constant 0 : index
    %c0_4 = arith.constant 0 : index
    %5 = vector.load %arg6[%c0_3, %c0_4] : memref<2x128xf32, #tpu.memory_space<vmem>>, vector<2x128xf32>
    %6 = arith.maximumf %5, %4 : vector<2x128xf32>
    %c0_5 = arith.constant 0 : index
    %c0_6 = arith.constant 0 : index
    %7 = vector.load %arg6[%c0_5, %c0_6] : memref<2x128xf32, #tpu.memory_space<vmem>>, vector<2x128xf32>
    tpu.vector_store %arg6[%c0_5, %c0_6], %6 {strides = array<i32>} : memref<2x128xf32, #tpu.memory_space<vmem>>, vector<2x128xf32>,
    %c0_i32_7 = arith.constant 0 : i32
    %8 = arith.cmpi eq, %arg1, %c0_i32_7 : i32
    %9 = arith.extui %8 : i1 to i32
    %c0_i32_8 = arith.constant 0 : i32
    %10 = arith.cmpi ne, %9, %c0_i32_8 : i32
    scf.if %10 {
      %c0_9 = arith.constant 0 : index
      %c0_10 = arith.constant 0 : index
      %11 = vector.load %arg6[%c0_9, %c0_10] : memref<2x128xf32, #tpu.memory_space<vmem>>, vector<2x128xf32>
      %12 = vector.extract_strided_slice %11 {offsets = [0, 0], sizes = [2, 4], strides = [1, 1]} : vector<2x128xf32> to vector<2x4xf32>
      %13 = vector.extract_strided_slice %11 {offsets = [0, 4], sizes = [2, 4], strides = [1, 1]} : vector<2x128xf32> to vector<2x4xf32>
      %14 = arith.maximumf %12, %13 : vector<2x4xf32>
      %15 = vector.extract_strided_slice %11 {offsets = [0, 8], sizes = [2, 4], strides = [1, 1]} : vector<2x128xf32> to vector<2x4xf32>
      %16 = arith.maximumf %14, %15 : vector<2x4xf32>
      %17 = vector.extract_strided_slice %11 {offsets = [0, 12], sizes = [2, 4], strides = [1, 1]} : vector<2x128xf32> to vector<2x4xf32>
      %18 = arith.maximumf %16, %17 : vector<2x4xf32>
      %19 = vector.extract_strided_slice %11 {offsets = [0, 16], sizes = [2, 4], strides = [1, 1]} : vector<2x128xf32> to vector<2x4xf32>
      %20 = arith.maximumf %18, %19 : vector<2x4xf32>
      %21 = vector.extract_strided_slice %11 {offsets = [0, 20], sizes = [2, 4], strides = [1, 1]} : vector<2x128xf32> to vector<2x4xf32>
      %22 = arith.maximumf %20, %21 : vector<2x4xf32>
      %23 = vector.extract_strided_slice %11 {offsets = [0, 24], sizes = [2, 4], strides = [1, 1]} : vector<2x128xf32> to vector<2x4xf32>
      %24 = arith.maximumf %22, %23 : vector<2x4xf32>
      %25 = vector.extract_strided_slice %11 {offsets = [0, 28], sizes = [2, 4], strides = [1, 1]} : vector<2x128xf32> to vector<2x4xf32>
      %26 = arith.maximumf %24, %25 : vector<2x4xf32>
      %27 = vector.extract_strided_slice %11 {offsets = [0, 32], sizes = [2, 4], strides = [1, 1]} : vector<2x128xf32> to vector<2x4xf32>
      %28 = arith.maximumf %26, %27 : vector<2x4xf32>
      %29 = vector.extract_strided_slice %11 {offsets = [0, 36], sizes = [2, 4], strides = [1, 1]} : vector<2x128xf32> to vector<2x4xf32>
      %30 = arith.maximumf %28, %29 : vector<2x4xf32>
      %31 = vector.extract_strided_slice %11 {offsets = [0, 40], sizes = [2, 4], strides = [1, 1]} : vector<2x128xf32> to vector<2x4xf32>
      %32 = arith.maximumf %30, %31 : vector<2x4xf32>
      %33 = vector.extract_strided_slice %11 {offsets = [0, 44], sizes = [2, 4], strides = [1, 1]} : vector<2x128xf32> to vector<2x4xf32>
      %34 = arith.maximumf %32, %33 : vector<2x4xf32>
      %35 = vector.extract_strided_slice %11 {offsets = [0, 48], sizes = [2, 4], strides = [1, 1]} : vector<2x128xf32> to vector<2x4xf32>
      %36 = arith.maximumf %34, %35 : vector<2x4xf32>
      %37 = vector.extract_strided_slice %11 {offsets = [0, 52], sizes = [2, 4], strides = [1, 1]} : vector<2x128xf32> to vector<2x4xf32>
      %38 = arith.maximumf %36, %37 : vector<2x4xf32>
      %39 = vector.extract_strided_slice %11 {offsets = [0, 56], sizes = [2, 4], strides = [1, 1]} : vector<2x128xf32> to vector<2x4xf32>
      %40 = arith.maximumf %38, %39 : vector<2x4xf32>
      %41 = vector.extract_strided_slice %11 {offsets = [0, 60], sizes = [2, 4], strides = [1, 1]} : vector<2x128xf32> to vector<2x4xf32>
      %42 = arith.maximumf %40, %41 : vector<2x4xf32>
      %43 = vector.extract_strided_slice %11 {offsets = [0, 64], sizes = [2, 4], strides = [1, 1]} : vector<2x128xf32> to vector<2x4xf32>
      %44 = arith.maximumf %42, %43 : vector<2x4xf32>
      %45 = vector.extract_strided_slice %11 {offsets = [0, 68], sizes = [2, 4], strides = [1, 1]} : vector<2x128xf32> to vector<2x4xf32>
      %46 = arith.maximumf %44, %45 : vector<2x4xf32>
      %47 = vector.extract_strided_slice %11 {offsets = [0, 72], sizes = [2, 4], strides = [1, 1]} : vector<2x128xf32> to vector<2x4xf32>
      %48 = arith.maximumf %46, %47 : vector<2x4xf32>
      %49 = vector.extract_strided_slice %11 {offsets = [0, 76], sizes = [2, 4], strides = [1, 1]} : vector<2x128xf32> to vector<2x4xf32>
      %50 = arith.maximumf %48, %49 : vector<2x4xf32>
      %51 = vector.extract_strided_slice %11 {offsets = [0, 80], sizes = [2, 4], strides = [1, 1]} : vector<2x128xf32> to vector<2x4xf32>
      %52 = arith.maximumf %50, %51 : vector<2x4xf32>
      %53 = vector.extract_strided_slice %11 {offsets = [0, 84], sizes = [2, 4], strides = [1, 1]} : vector<2x128xf32> to vector<2x4xf32>
      %54 = arith.maximumf %52, %53 : vector<2x4xf32>
      %55 = vector.extract_strided_slice %11 {offsets = [0, 88], sizes = [2, 4], strides = [1, 1]} : vector<2x128xf32> to vector<2x4xf32>
      %56 = arith.maximumf %54, %55 : vector<2x4xf32>
      %57 = vector.extract_strided_slice %11 {offsets = [0, 92], sizes = [2, 4], strides = [1, 1]} : vector<2x128xf32> to vector<2x4xf32>
      %58 = arith.maximumf %56, %57 : vector<2x4xf32>
      %59 = vector.extract_strided_slice %11 {offsets = [0, 96], sizes = [2, 4], strides = [1, 1]} : vector<2x128xf32> to vector<2x4xf32>
      %60 = arith.maximumf %58, %59 : vector<2x4xf32>
      %61 = vector.extract_strided_slice %11 {offsets = [0, 100], sizes = [2, 4], strides = [1, 1]} : vector<2x128xf32> to vector<2x4xf32>
      %62 = arith.maximumf %60, %61 : vector<2x4xf32>
      %63 = vector.extract_strided_slice %11 {offsets = [0, 104], sizes = [2, 4], strides = [1, 1]} : vector<2x128xf32> to vector<2x4xf32>
      %64 = arith.maximumf %62, %63 : vector<2x4xf32>
      %65 = vector.extract_strided_slice %11 {offsets = [0, 108], sizes = [2, 4], strides = [1, 1]} : vector<2x128xf32> to vector<2x4xf32>
      %66 = arith.maximumf %64, %65 : vector<2x4xf32>
      %67 = vector.extract_strided_slice %11 {offsets = [0, 112], sizes = [2, 4], strides = [1, 1]} : vector<2x128xf32> to vector<2x4xf32>
      %68 = arith.maximumf %66, %67 : vector<2x4xf32>
      %69 = vector.extract_strided_slice %11 {offsets = [0, 116], sizes = [2, 4], strides = [1, 1]} : vector<2x128xf32> to vector<2x4xf32>
      %70 = arith.maximumf %68, %69 : vector<2x4xf32>
      %71 = vector.extract_strided_slice %11 {offsets = [0, 120], sizes = [2, 4], strides = [1, 1]} : vector<2x128xf32> to vector<2x4xf32>
      %72 = arith.maximumf %70, %71 : vector<2x4xf32>
      %73 = vector.extract_strided_slice %11 {offsets = [0, 124], sizes = [2, 4], strides = [1, 1]} : vector<2x128xf32> to vector<2x4xf32>
      %74 = arith.maximumf %72, %73 : vector<2x4xf32>
      %c0_11 = arith.constant 0 : index
      %c0_12 = arith.constant 0 : index
      %75 = vector.load %arg4[%c0_11, %c0_12] : memref<2x4xf32, #tpu.memory_space<vmem>>, vector<2x4xf32>
      %c0_13 = arith.constant 0 : index
      %c0_14 = arith.constant 0 : index
      %76 = vector.load %arg2[%c0_13, %c0_14] : memref<2x4xf32, #tpu.memory_space<vmem>>, vector<2x4xf32>
      %77 = math.absf %76 : vector<2x4xf32>
      %cst_15 = arith.constant 0.000000e+00 : f32
      %78 = vector.broadcast %cst_15 : f32 to vector<2x4xf32>
      %79 = arith.subf %78, %77 : vector<2x4xf32>
      %80 = math.exp %79 : vector<2x4xf32>
      %cst_16 = arith.constant 0.000000e+00 : f32
      %81 = vector.broadcast %cst_16 : f32 to vector<2x4xf32>
      %82 = arith.maximumf %76, %81 : vector<2x4xf32>
      %83 = arith.mulf %76, %75 : vector<2x4xf32>
      %84 = arith.subf %82, %83 : vector<2x4xf32>
      %85 = math.log1p %80 : vector<2x4xf32>
      %86 = arith.addf %84, %85 : vector<2x4xf32>
      %cst_17 = arith.constant 1.000000e+00 : f32
      %87 = vector.broadcast %cst_17 : f32 to vector<2x4xf32>
      %88 = arith.addf %87, %80 : vector<2x4xf32>
      %cst_18 = arith.constant 1.000000e+00 : f32
      %89 = vector.broadcast %cst_18 : f32 to vector<2x4xf32>
      %90 = arith.divf %89, %88 : vector<2x4xf32>
      %cst_19 = arith.constant 0.000000e+00 : f32
      %91 = vector.broadcast %cst_19 : f32 to vector<2x4xf32>
      %92 = arith.cmpf oge, %76, %91 : vector<2x4xf32>
      %93 = arith.mulf %80, %90 : vector<2x4xf32>
      %94 = arith.select %92, %90, %93 : vector<2x4xi1>, vector<2x4xf32>
      %cst_20 = arith.constant 2.500000e-01 : f32
      %95 = vector.broadcast %cst_20 : f32 to vector<2x4xf32>
      %96 = arith.mulf %75, %95 : vector<2x4xf32>
      %cst_21 = arith.constant 1.000000e+00 : f32
      %97 = vector.broadcast %cst_21 : f32 to vector<2x4xf32>
      %98 = arith.subf %97, %94 : vector<2x4xf32>
      %99 = arith.mulf %98, %98 : vector<2x4xf32>
      %100 = arith.mulf %96, %99 : vector<2x4xf32>
      %cst_22 = arith.constant 1.000000e+00 : f32
      %101 = vector.broadcast %cst_22 : f32 to vector<2x4xf32>
      %102 = arith.subf %101, %75 : vector<2x4xf32>
      %103 = arith.mulf %94, %94 : vector<2x4xf32>
      %104 = arith.mulf %102, %103 : vector<2x4xf32>
      %105 = arith.addf %100, %104 : vector<2x4xf32>
      %106 = arith.mulf %86, %105 : vector<2x4xf32>
      %107 = vector.shape_cast %106 : vector<2x4xf32> to vector<1x2x4xf32>
      %cst_23 = arith.constant dense<0.000000e+00> : vector<1xf32>
      %108 = vector.multi_reduction <add>, %107, %cst_23 [1, 2] : vector<1x2x4xf32> to vector<1xf32>
      %109 = vector.shape_cast %108 : vector<1xf32> to vector<1x1x1xf32>
      %110 = vector.extract %109[0, 0, 0] : f32 from vector<1x1x1xf32>
      %111 = math.absf %74 : vector<2x4xf32>
      %cst_24 = arith.constant 0.000000e+00 : f32
      %112 = vector.broadcast %cst_24 : f32 to vector<2x4xf32>
      %113 = arith.subf %112, %111 : vector<2x4xf32>
      %114 = math.exp %113 : vector<2x4xf32>
      %cst_25 = arith.constant 0.000000e+00 : f32
      %115 = vector.broadcast %cst_25 : f32 to vector<2x4xf32>
      %116 = arith.maximumf %74, %115 : vector<2x4xf32>
      %117 = arith.mulf %74, %75 : vector<2x4xf32>
      %118 = arith.subf %116, %117 : vector<2x4xf32>
      %119 = math.log1p %114 : vector<2x4xf32>
      %120 = arith.addf %118, %119 : vector<2x4xf32>
      %cst_26 = arith.constant 1.000000e+00 : f32
      %121 = vector.broadcast %cst_26 : f32 to vector<2x4xf32>
      %122 = arith.addf %121, %114 : vector<2x4xf32>
      %cst_27 = arith.constant 1.000000e+00 : f32
      %123 = vector.broadcast %cst_27 : f32 to vector<2x4xf32>
      %124 = arith.divf %123, %122 : vector<2x4xf32>
      %cst_28 = arith.constant 0.000000e+00 : f32
      %125 = vector.broadcast %cst_28 : f32 to vector<2x4xf32>
      %126 = arith.cmpf oge, %74, %125 : vector<2x4xf32>
      %127 = arith.mulf %114, %124 : vector<2x4xf32>
      %128 = arith.select %126, %124, %127 : vector<2x4xi1>, vector<2x4xf32>
      %cst_29 = arith.constant 2.500000e-01 : f32
      %129 = vector.broadcast %cst_29 : f32 to vector<2x4xf32>
      %130 = arith.mulf %75, %129 : vector<2x4xf32>
      %cst_30 = arith.constant 1.000000e+00 : f32
      %131 = vector.broadcast %cst_30 : f32 to vector<2x4xf32>
      %132 = arith.subf %131, %128 : vector<2x4xf32>
      %133 = arith.mulf %132, %132 : vector<2x4xf32>
      %134 = arith.mulf %130, %133 : vector<2x4xf32>
      %cst_31 = arith.constant 1.000000e+00 : f32
      %135 = vector.broadcast %cst_31 : f32 to vector<2x4xf32>
      %136 = arith.subf %135, %75 : vector<2x4xf32>
      %137 = arith.mulf %128, %128 : vector<2x4xf32>
      %138 = arith.mulf %136, %137 : vector<2x4xf32>
      %139 = arith.addf %134, %138 : vector<2x4xf32>
      %140 = arith.mulf %120, %139 : vector<2x4xf32>
      %141 = vector.shape_cast %140 : vector<2x4xf32> to vector<1x2x4xf32>
      %cst_32 = arith.constant dense<0.000000e+00> : vector<1xf32>
      %142 = vector.multi_reduction <add>, %141, %cst_32 [1, 2] : vector<1x2x4xf32> to vector<1xf32>
      %143 = vector.shape_cast %142 : vector<1xf32> to vector<1x1x1xf32>
      %144 = vector.extract %143[0, 0, 0] : f32 from vector<1x1x1xf32>
      %cst_33 = arith.constant 1.000000e+00 : f32
      %145 = arith.mulf %cst_33, %110 : f32
      %cst_34 = arith.constant 1.000000e+00 : f32
      %146 = arith.mulf %cst_34, %144 : f32
      %147 = arith.addf %145, %146 : f32
      %148 = vector.broadcast %147 : f32 to vector<8x128xf32>
      %c0_35 = arith.constant 0 : index
      %c0_36 = arith.constant 0 : index
      %149 = vector.load %arg5[%c0_35, %c0_36] : memref<8x128xf32, #tpu.memory_space<vmem>>, vector<8x128xf32>
      tpu.vector_store %arg5[%c0_35, %c0_36], %148 {strides = array<i32>} : memref<8x128xf32, #tpu.memory_space<vmem>>, vector<8x128xf32>,
    } else {
    }
    return
  }
  func.func @transform_0(%arg0: i32, %arg1: i32) -> (i32, i32) {
    %c0_i32 = arith.constant 0 : i32
    %c0_i32_0 = arith.constant 0 : i32
    return %arg0, %c0_i32 : i32, i32
  }
  func.func @transform_1(%arg0: i32, %arg1: i32) -> (i32, i32, i32) {
    %c0_i32 = arith.constant 0 : i32
    %c0_i32_0 = arith.constant 0 : i32
    return %arg0, %arg1, %c0_i32 : i32, i32, i32
  }
  func.func @transform_2(%arg0: i32, %arg1: i32) -> (i32, i32) {
    %c0_i32 = arith.constant 0 : i32
    %c0_i32_0 = arith.constant 0 : i32
    return %arg0, %c0_i32 : i32, i32
  }
  func.func @transform_3(%arg0: i32, %arg1: i32) -> (i32, i32) {
    %c0_i32 = arith.constant 0 : i32
    %c0_i32_0 = arith.constant 0 : i32
    return %arg0, %c0_i32 : i32, i32
  }
}

</mosaic_0001>

<bundles_post_ra>
// kernel: tpu_custom_call.1
= control target key start
LH: loop header
LB: loop body
LE: loop exit
PB: predicated region body
PF: predicated region fallthrough
CT: control target
= control target key end

     0   :  { %8 = vsyncpa [#allocation4], 0  ;;  %s611_s0 = inlined_call_operand.hbm [shape: f32[2,4], index: 0, kind: input, shape index: {}]   ;;  %s612_s1 = inlined_call_operand.hbm [shape: f32[2,1,128], index: 1, kind: input, shape index: {}]   ;;  %s613_s2 = inlined_call_operand.hbm [shape: f32[2,4], index: 2, kind: input, shape index: {}]   ;;  %s614_s3 = inlined_call_operand.hbm [shape: f32[8,128], index: 3, kind: output, shape index: {}]  }
   0x1   :  { %9 = vsyncpa [#allocation7], 0  ;;  %s26_s14 = sshll.u32 %s612_s1, 4  ;;  %s27_s14 = int_to_ptr.hbm [resolvable:$true] %s26_s14 }
   0x2   :  { %10 = vsyncpa [#allocation5], 0  ;;  %s491_s15 = smov [#allocation6]   ;;  %s16_s19 = sshll.u32 %s611_s0, 4  ;;  %s17_s19 = int_to_ptr.hbm [resolvable:$true] %s16_s19 }
   0x3   :  { %s28_s16 = sshll.u32 %s491_s15, 4  ;;  %s492_s20 = smov 16   ;;  %s29_s16 = int_to_ptr.vmem [resolvable:$true] %s28_s16 }
   0x4   :  { %s493_s21 = smov 1   ;;  %s494_s22 = smov [#allocation3]  }
   0x5   :  { %34 = dma.hbm_to_vmem [thread:$0]  %s27_s14, 32, %s29_s16, [#allocation7], %s492_s20, %s492_s20, %s493_s21  }
   0x6   :  { %s18_s23 = sshll.u32 %s494_s22, 4  ;;  %s40_s1 = sshll.u32 %s613_s2, 4  ;;  %s19_s23 = int_to_ptr.vmem [resolvable:$true] %s18_s23  ;;  %s41_s1 = int_to_ptr.hbm [resolvable:$true] %s40_s1 }
   0x7   :  { %21 = dma.hbm_to_vmem [thread:$0]  %s17_s19, 32, %s19_s23, [#allocation4]  }
   0x8   :  { %s495_s26 = smov [#allocation8]  }
   0x9   :  { %s42_s27 = sshll.u32 %s495_s26, 4  ;;  %s43_s27 = int_to_ptr.vmem [resolvable:$true] %s42_s27 }
   0xa   :  { %45 = dma.hbm_to_vmem [thread:$0]  %s41_s1, 32, %s43_s27, [#allocation7]  }
   0xb   :  { %485 = dma.done.wait [#allocation4], 32  }
   0xc   :  { %486 = vsyncadd [#allocation4], 4294967264 }
   0xd   :  { %487 = dma.done.wait [#allocation7], 64  }
   0xe   :  { %488 = vsyncadd [#allocation7], 4294967232  ;;  %v496_v0 = vmov -inf   ;;  %v63_v1 = vld [vmem:[#allocation6] sm:$0x1]  ;;  %s497_s0 = smov 124  }
   0xf   :  { %62 = vst [vmem:[#allocation2] sm:$0x3] %v496_v0  ;;  %v64_v2 = vld [vmem:[#allocation6 + $0x1] sm:$0x1]  ;;  %s498_s2 = smov 116   ;;  %s499_s28 = smov 108  }
  0x10   :  { %68 = vst [vmem:[#allocation1] ss:$9 sm:$0xff] %v63_v1  ;;  %s500_s29 = smov 120   ;;  %s501_s30 = smov 112   ;;  %v594_v42 = vld [vmem:[#allocation3] sm:$0x3] }
  0x11   :  { %70 = vst [vmem:[#allocation1 + $0x1] ss:$9 sm:$0xff] %v64_v2  ;;  %s502_s4 = smov 104   ;;  %s503_s5 = smov 100   ;;  %v206_v44 = vand.u32 2147483647, %v594_v42 }
  0x12   :  { %s504_s6 = smov 96   ;;  %s505_s7 = smov 92   ;;  %vm239_vm4 = vcmp.ge.f32.partialorder %v594_v42, 0.0  ;;  %vm251_vm6 = vcmask 25600  }
  0x13   :  { %s506_s8 = smov 88   ;;  %s507_s9 = smov 84   ;;  %v207_v46 = vsub.f32 0.0, %v206_v44 }
  0x14   :  { %s508_s10 = smov 80   ;;  %s509_s11 = smov 76  }
  0x15   :  { %s510_s12 = smov 72   ;;  %s511_s13 = smov 68   ;;  %v208_v50 = vmul.f32 1.442695, %v207_v46 }
  0x16   :  { %v65_v3 = vld [vmem:[#allocation2] sm:$0x3]  ;;  %s512_s14 = smov 64   ;;  %s513_s15 = smov 60  }
  0x17   :  { %s514_s16 = smov 56   ;;  %s515_s17 = smov 52   ;;  %377 = vpow2.f32 %v208_v50 }
  0x18   :  { %v71_v4 = vld [vmem:[#allocation1] sm:$0xff]  ;;  %s516_s18 = smov 48   ;;  %s517_s19 = smov 44  }
  0x19   :  { %v73_v5 = vmax.f32 %v65_v3, %v71_v4  ;;  %s518_s21 = smov 40   ;;  %s519_s22 = smov 36  }
  0x1a   :  { %s520_s23 = smov 32   ;;  %s521_s24 = smov 28  }
  0x1b   :  { %74 = vst [vmem:[#allocation2] sm:$0x3] %v73_v5  ;;  %s522_s25 = smov 24   ;;  %s523_s1 = smov 20  }
  0x1c   :  { %s524_s26 = smov 12   ;;  %s525_s27 = smov 8  }
  0x1d   :  { %v378_v56 = vpop.eup %377 }
  0x1e   :  { %v213_v58 = vadd.f32 1.0, %v378_v56  ;;  %v216_v4 = vmul.f32 -0.5, %v378_v56 }
  0x20   :  { %379 = vrcp.f32 %v213_v58  ;;  %v235_v5 = vand.u32 2147483648, %v213_v58  ;;  %vm229_vm0 = vweird.f32 %v213_v58 }
  0x21   :  { %381 = vlog2.f32 %v213_v58 }
  0x22   :  { %v559_v6 = vld [vmem:[#allocation2] sm:$0x3] }
  0x23   :  { %80 = vrot.lane.b32.xlu0 %v559_v6, %s497_s0  ;;  %88 = vrot.lane.b32.xlu1 %v559_v6, %s498_s2  ;;  %s526_s0 = smov 4  }
  0x24   :  { %96 = vrot.lane.b32.xlu2 %v559_v6, %s499_s28 }
  0x26   :  { %v380_v1 = vpop.eup %379 }
  0x27   :  { %v225_v3 = vmul.f32 %v380_v1, %v213_v58  ;;  %vm230_vm1 = vweird.f32 %v380_v1 }
  0x28   :  { %vm231_vm2 = vmor %vm229_vm0, %vm230_vm1 }
  0x2b   :  { %84 = vrot.lane.b32.xlu0 %v559_v6, %s500_s29  ;;  %92 = vrot.lane.b32.xlu1 %v559_v6, %s501_s30 }
  0x2c   :  { %100 = vrot.lane.b32.xlu2 %v559_v6, %s502_s4  ;;  %s325_s4 = sshll.u32 %s614_s3, 4  ;;  %s326_s4 = int_to_ptr.hbm [resolvable:$true] %s325_s4 }
  0x33   :  { %104 = vrot.lane.b32.xlu0 %v559_v6, %s503_s5  ;;  %108 = vrot.lane.b32.xlu1 %v559_v6, %s504_s6 }
  0x34   :  { %112 = vrot.lane.b32.xlu2 %v559_v6, %s505_s7 }
  0x3b   :  { %116 = vrot.lane.b32.xlu0 %v559_v6, %s506_s8  ;;  %120 = vrot.lane.b32.xlu1 %v559_v6, %s507_s9 }
  0x3c   :  { %124 = vrot.lane.b32.xlu2 %v559_v6, %s508_s10 }
  0x43   :  { %128 = vrot.lane.b32.xlu0 %v559_v6, %s509_s11  ;;  %132 = vrot.lane.b32.xlu1 %v559_v6, %s510_s12 }
  0x44   :  { %136 = vrot.lane.b32.xlu2 %v559_v6, %s511_s13 }
  0x4b   :  { %140 = vrot.lane.b32.xlu0 %v559_v6, %s512_s14  ;;  %144 = vrot.lane.b32.xlu1 %v559_v6, %s513_s15 }
  0x4c   :  { %148 = vrot.lane.b32.xlu2 %v559_v6, %s514_s16 }
  0x53   :  { %152 = vrot.lane.b32.xlu0 %v559_v6, %s515_s17  ;;  %156 = vrot.lane.b32.xlu1 %v559_v6, %s516_s18 }
  0x54   :  { %160 = vrot.lane.b32.xlu2 %v559_v6, %s517_s19 }
  0x5b   :  { %164 = vrot.lane.b32.xlu0 %v559_v6, %s518_s21  ;;  %168 = vrot.lane.b32.xlu1 %v559_v6, %s519_s22 }
  0x5c   :  { %172 = vrot.lane.b32.xlu2 %v559_v6, %s520_s23 }
  0x63   :  { %176 = vrot.lane.b32.xlu0 %v559_v6, %s521_s24  ;;  %180 = vrot.lane.b32.xlu1 %v559_v6, %s522_s25 }
  0x64   :  { %184 = vrot.lane.b32.xlu2 %v559_v6, %s523_s1 }
  0x6b   :  { %188 = vrot.lane.b32.xlu0 %v559_v6, %s492_s20  ;;  %192 = vrot.lane.b32.xlu1 %v559_v6, %s524_s26  ;;  %s527_s20 = smov [#allocation9]  }
  0x6c   :  { %196 = vrot.lane.b32.xlu2 %v559_v6, %s525_s27  ;;  %s323_s2 = sshll.u32 %s527_s20, 4  ;;  %s324_s2 = int_to_ptr.vmem [resolvable:$true] %s323_s2 }
  0x73   :  { %200 = vrot.lane.b32.xlu0 %v559_v6, %s526_s0 }
  0x7e   :  { %v97_v7 = vpop.permute.xlu2 %96 }
  0x86   :  { %v101_v8 = vpop.permute.xlu2 %100 }
  0x8e   :  { %v113_v11 = vpop.permute.xlu2 %112 }
  0x95   :  { %v81_v9 = vpop.permute.xlu0 %80  ;;  %v89_v10 = vpop.permute.xlu1 %88 }
  0x96   :  { %v83_v12 = vmax.f32 %v559_v6, %v81_v9  ;;  %v125_v19 = vpop.permute.xlu2 %124  ;;  %v226_v6 = vsub.f32 1.0, %v225_v3 }
  0x9d   :  { %v85_v13 = vpop.permute.xlu0 %84  ;;  %v93_v14 = vpop.permute.xlu1 %92 }
  0x9e   :  { %v87_v15 = vmax.f32 %v83_v12, %v85_v13  ;;  %v137_v29 = vpop.permute.xlu2 %136  ;;  %v236_v13 = vor.u32 1.1754944e-38, %v235_v5 }
  0xa0   :  { %v91_v16 = vmax.f32 %v87_v15, %v89_v10 }
  0xa2   :  { %v95_v17 = vmax.f32 %v91_v16, %v93_v14  ;;  %v217_v14 = vadd.f32 1.0, %v216_v4  ;;  %v382_v16 = vpop.eup %381 }
  0xa4   :  { %v99_v18 = vmax.f32 %v95_v17, %v97_v7  ;;  %v233_v7 = vand.u32 2147483647, %v213_v58 }
  0xa5   :  { %v105_v20 = vpop.permute.xlu0 %104  ;;  %v109_v21 = vpop.permute.xlu1 %108 }
  0xa6   :  { %v103_v22 = vmax.f32 %v99_v18, %v101_v8  ;;  %v149_v36 = vpop.permute.xlu2 %148  ;;  %vm234_vm3 = vcmp.eq.f32.partialorder %v233_v7, 8.507059e+37  ;;  %v219_v18 = vand.u32 2147483647, %v378_v56 }
  0xa8   :  { %v107_v23 = vmax.f32 %v103_v22, %v105_v20  ;;  %v597_v20 = vld [vmem:[#allocation8] sm:$0x3]  ;;  %v210_v22 = vmax.f32 %v594_v42, 0.0  ;;  %vm220_vm5 = vcmp.lt.f32.partialorder %v219_v18, 0.0004427343 }
  0xaa   :  { %v111_v24 = vmax.f32 %v107_v23, %v109_v21  ;;  %v211_v23 = vmul.f32 %v594_v42, %v597_v20 }
  0xac   :  { %v115_v25 = vmax.f32 %v111_v24, %v113_v11  ;;  %v227_v11 = vmul.f32 %v380_v1, %v226_v6 }
  0xad   :  { %v117_v26 = vpop.permute.xlu0 %116  ;;  %v121_v27 = vpop.permute.xlu1 %120 }
  0xae   :  { %v119_v28 = vmax.f32 %v115_v25, %v117_v26  ;;  %v161_v43 = vpop.permute.xlu2 %160  ;;  %v228_v15 = vadd.f32 %v380_v1, %v227_v11  ;;  %v215_v25 = vmul.f32 0.6931472, %v382_v16  ;;  %v218_v26 = vmul.f32 %v378_v56, %v217_v14 }
  0xb0   :  { %v123_v30 = vmax.f32 %v119_v28, %v121_v27  ;;  %v232_v21 = vsel %vm231_vm2, %v380_v1, %v228_v15 }
  0xb1   :  { %v237_v24 = vsel %vm234_vm3, %v236_v13, %v232_v21 }
  0xb2   :  { %v127_v31 = vmax.f32 %v123_v30, %v125_v19  ;;  %v240_v27 = vmul.f32 %v378_v56, %v237_v24 }
  0xb5   :  { %v129_v32 = vpop.permute.xlu0 %128  ;;  %v133_v33 = vpop.permute.xlu1 %132 }
  0xb6   :  { %v131_v34 = vmax.f32 %v127_v31, %v129_v32  ;;  %v173_v53 = vpop.permute.xlu2 %172  ;;  %v241_v31 = vsel %vm239_vm4, %v237_v24, %v240_v27  ;;  %v242_v32 = vmul.f32 0.25, %v597_v20 }
  0xb8   :  { %v135_v35 = vmax.f32 %v131_v34, %v133_v33  ;;  %v212_v34 = vsub.f32 %v210_v22, %v211_v23 }
  0xba   :  { %v139_v37 = vmax.f32 %v135_v35, %v137_v29  ;;  %v246_v29 = vsub.f32 1.0, %v597_v20  ;;  %v243_v35 = vsub.f32 1.0, %v241_v31 }
  0xbd   :  { %v141_v38 = vpop.permute.xlu0 %140  ;;  %v145_v39 = vpop.permute.xlu1 %144 }
  0xbe   :  { %v143_v40 = vmax.f32 %v139_v37, %v141_v38  ;;  %v185_v0 = vpop.permute.xlu2 %184  ;;  %v221_v37 = vsel %vm220_vm5, %v218_v26, %v215_v25 }
  0xbf   :  { %v222_v42 = vadd.f32 %v221_v37, %v212_v34 }
  0xc0   :  { %v147_v41 = vmax.f32 %v143_v40, %v145_v39  ;;  %v244_v39 = vmul.f32 %v243_v35, %v243_v35 }
  0xc2   :  { %v151_v45 = vmax.f32 %v147_v41, %v149_v36  ;;  %v247_v36 = vmul.f32 %v241_v31, %v241_v31 }
  0xc4   :  { %v248_v40 = vmul.f32 %v247_v36, %v246_v29 }
  0xc5   :  { %v153_v47 = vpop.permute.xlu0 %152  ;;  %v157_v48 = vpop.permute.xlu1 %156 }
  0xc6   :  { %v155_v49 = vmax.f32 %v151_v45, %v153_v47  ;;  %v197_v19 = vpop.permute.xlu2 %196 }
  0xc8   :  { %v159_v51 = vmax.f32 %v155_v49, %v157_v48 }
  0xca   :  { %v163_v52 = vmax.f32 %v159_v51, %v161_v43  ;;  %v245_v43 = vmul.f32 %v244_v39, %v242_v32 }
  0xcc   :  { %v249_v45 = vadd.f32 %v248_v40, %v245_v43 }
  0xcd   :  { %v165_v54 = vpop.permute.xlu0 %164  ;;  %v169_v55 = vpop.permute.xlu1 %168 }
  0xce   :  { %v167_v57 = vmax.f32 %v163_v52, %v165_v54  ;;  %v250_v46 = vmul.f32 %v249_v45, %v222_v42 }
  0xd0   :  { %v171_v59 = vmax.f32 %v167_v57, %v169_v55  ;;  %v252_v47 = vsel %vm251_vm6, %v250_v46, 0.0 }
  0xd1   :  { %253 = vadd.xlane.f32.xlu1 %v252_v47 }
  0xd2   :  { %v175_v60 = vmax.f32 %v171_v59, %v173_v53 }
  0xd5   :  { %v177_v61 = vpop.permute.xlu0 %176  ;;  %v181_v62 = vpop.permute.xlu1 %180 }
  0xd6   :  { %v179_v63 = vmax.f32 %v175_v60, %v177_v61 }
  0xd8   :  { %v183_v2 = vmax.f32 %v179_v63, %v181_v62 }
  0xda   :  { %v187_v8 = vmax.f32 %v183_v2, %v185_v0 }
  0xdd   :  { %v189_v9 = vpop.permute.xlu0 %188  ;;  %v193_v10 = vpop.permute.xlu1 %192 }
  0xde   :  { %v191_v12 = vmax.f32 %v187_v8, %v189_v9 }
  0xe0   :  { %v195_v17 = vmax.f32 %v191_v12, %v193_v10 }
  0xe2   :  { %v199_v28 = vmax.f32 %v195_v17, %v197_v19 }
  0xe5   :  { %v201_v30 = vpop.permute.xlu0 %200 }
  0xe6   :  { %v203_v33 = vmax.f32 %v199_v28, %v201_v30 }
  0xe8   :  { %v262_v38 = vand.u32 2147483647, %v203_v33  ;;  %vm295_vm11 = vcmp.ge.f32.partialorder %v203_v33, 0.0  ;;  %v266_v3 = vmax.f32 %v203_v33, 0.0  ;;  %v267_v4 = vmul.f32 %v597_v20, %v203_v33 }
  0xea   :  { %v263_v41 = vsub.f32 0.0, %v262_v38  ;;  %v268_v10 = vsub.f32 %v266_v3, %v267_v4 }
  0xec   :  { %v264_v44 = vmul.f32 1.442695, %v263_v41 }
  0xee   :  { %383 = vpow2.f32 %v264_v44 }
  0xf4   :  { %v384_v48 = vpop.eup %383 }
  0xf5   :  { %v269_v49 = vadd.f32 1.0, %v384_v48  ;;  %v272_v56 = vmul.f32 -0.5, %v384_v48  ;;  %v275_v0 = vand.u32 2147483647, %v384_v48 }
  0xf7   :  { %385 = vrcp.f32 %v269_v49  ;;  %v291_v53 = vand.u32 2147483648, %v269_v49  ;;  %v289_v55 = vand.u32 2147483647, %v269_v49  ;;  %vm285_vm8 = vweird.f32 %v269_v49 }
  0xf8   :  { %387 = vlog2.f32 %v269_v49  ;;  %v273_v62 = vadd.f32 1.0, %v272_v56  ;;  %vm276_vm12 = vcmp.lt.f32.partialorder %v275_v0, 0.0004427343 }
  0xf9   :  { %v292_v58 = vor.u32 1.1754944e-38, %v291_v53  ;;  %vm290_vm10 = vcmp.eq.f32.partialorder %v289_v55, 8.507059e+37 }
  0xfa   :  { %v274_v7 = vmul.f32 %v384_v48, %v273_v62 }
  0xfd   :  { %v386_v50 = vpop.eup %385 }
  0xfe   :  { %v281_v51 = vmul.f32 %v386_v50, %v269_v49  ;;  %vm286_vm7 = vweird.f32 %v386_v50  ;;  %v388_v60 = vpop.eup %387 }
  0xff   :  { %vm287_vm9 = vmor %vm285_vm8, %vm286_vm7  ;;  %v271_v1 = vmul.f32 0.6931472, %v388_v60 }
 0x100   :  { %v282_v52 = vsub.f32 1.0, %v281_v51 }
 0x101   :  { %v277_v9 = vsel %vm276_vm12, %v274_v7, %v271_v1 }
 0x102   :  { %v283_v54 = vmul.f32 %v386_v50, %v282_v52  ;;  %v278_v13 = vadd.f32 %v277_v9, %v268_v10 }
 0x104   :  { %v284_v57 = vadd.f32 %v386_v50, %v283_v54 }
 0x106   :  { %v288_v59 = vsel %vm287_vm9, %v386_v50, %v284_v57 }
 0x107   :  { %v293_v61 = vsel %vm290_vm10, %v292_v58, %v288_v59 }
 0x108   :  { %v296_v63 = vmul.f32 %v384_v48, %v293_v61 }
 0x10a   :  { %v297_v2 = vsel %vm295_vm11, %v293_v61, %v296_v63 }
 0x10b   :  { %v298_v5 = vsub.f32 1.0, %v297_v2  ;;  %v301_v6 = vmul.f32 %v297_v2, %v297_v2 }
 0x10d   :  { %v299_v8 = vmul.f32 %v298_v5, %v298_v5  ;;  %v302_v12 = vmul.f32 %v301_v6, %v246_v29 }
 0x10f   :  { %v300_v11 = vmul.f32 %v299_v8, %v242_v32 }
 0x111   :  { %v303_v14 = vadd.f32 %v302_v12, %v300_v11 }
 0x113   :  { %v304_v15 = vmul.f32 %v303_v14, %v278_v13 }
 0x115   :  { %v305_v16 = vsel %vm251_vm6, %v304_v15, 0.0 }
 0x116   :  { %306 = vadd.xlane.f32.xlu2 %v305_v16 }
 0x144   :  { %v254_v17 = vpop.xlane.xlu1 %253 }
 0x145   :  { %v255_v18 = vrot.slane %v254_v17, 4 }
 0x147   :  { %v256_v19 = vadd.f32 %v255_v18, %v254_v17 }
 0x149   :  { %v257_v21 = vrot.slane %v256_v19, 2 }
 0x14b   :  { %v258_v20 = vadd.f32 %v257_v21, %v256_v19 }
 0x14d   :  { %v259_v22 = vrot.slane %v258_v20, 1 }
 0x14f   :  { %v260_v23 = vadd.f32 %v259_v22, %v258_v20 }
 0x151   :  { %336 = vpush %v260_v23 }
 0x182   :  { %s337_s28 = spop %336 }
 0x189   :  { %v307_v24 = vpop.xlane.xlu2 %306 }
 0x18a   :  { %v308_v25 = vrot.slane %v307_v24, 4 }
 0x18c   :  { %v309_v26 = vadd.f32 %v308_v25, %v307_v24 }
 0x18e   :  { %v310_v27 = vrot.slane %v309_v26, 2 }
 0x190   :  { %v311_v28 = vadd.f32 %v310_v27, %v309_v26 }
 0x192   :  { %v312_v29 = vrot.slane %v311_v28, 1 }
 0x194   :  { %v313_v30 = vadd.f32 %v312_v29, %v311_v28 }
 0x196   :  { %338 = vpush %v313_v30 }
 0x1c7   :  { %s339_s5 = spop %338 }
 0x1c8   :  { %s315_s6 = sadd.f32 %s339_s5, %s337_s28 }
 0x1ca   :  { %v316_v31 = vstv %s315_s6 }
 0x1cb   :  { %317 = vst [vmem:[#allocation9] sm:$0xff] %v316_v31 }
 0x1cc   :  { %328 = dma.vmem_to_hbm [thread:$0]  %s324_s2, 128, %s326_s4, [#allocation5]  }
 0x1cd   :  { %489 = dma.done.wait [#allocation5], 128  }
 0x1ce   :  { %490 = vsyncadd [#allocation5], 4294967168 }
 0x1cf   :  { %333 = vsyncpa [#allocation4], 1 }
 0x1d0   :  { %334 = vsyncpa [#allocation7], 1 }
 0x1d1   :  { %335 = vsyncpa [#allocation5], 1 }

</bundles_post_ra>
